<compile_context>
chip_gen: v6e
topology: v6e:2x2x1
jax: 0.10.0
libtpu: 0.0.40
codegen_flags: <defaults>
</compile_context>

<pallas_src>
import jax
import jax.numpy as jnp
from jax.experimental import pallas as pl
from jax.experimental.pallas import tpu as pltpu


def _identity_kernel(x_ref, o_ref):
    # Whole-tile load / store — the "hot path" of MaskFlow.forward, which is
    # a no-op on the data.
    o_ref[...] = x_ref[...]


def _tile_bytes_for_device() -> int:
    """Generation-aware per-tile byte budget for the (optional) copy kernel."""
    try:
        kind = jax.devices()[0].device_kind.lower()
    except Exception:  # pragma: no cover - defensive
        return 2 << 20
    if "v7" in kind or "v6" in kind:
        # 4 MiB tile -> double-buffered in+out = 16 MiB, inside the 32 MiB
        # scoped VMEM default on v6e/v7x.
        return 4 << 20
    # v5e (and unknown): 2 MiB tile -> 8 MiB footprint, safe under the 16 MiB
    # scoped VMEM default.
    return 2 << 20


def _choose_lane(total: int) -> int | None:
    """Widest power-of-two lane (>=128) that exactly divides `total`."""
    candidates = (8192, 4096, 2048, 1024, 512, 256, 128)
    # Prefer a lane that still leaves >= 8 rows (gives the grid something to
    # split on), otherwise take any exact divisor.
    for lane in candidates:
        if total % lane == 0 and total // lane >= 8:
            return lane
    for lane in candidates:
        if total % lane == 0:
            return lane
    return None


def _choose_tile_rows(rows: int, budget_rows: int) -> int:
    """Largest multiple-of-32 divisor of `rows` within budget, else full rows.

    Returning `rows` (i.e. a single block spanning the full first dim) is
    always legal: a block dim equal to the full array dim satisfies the
    (8, 128) tiling constraint regardless of value.
    """
    if rows <= budget_rows:
        return rows
    start = budget_rows - (budget_rows % 32)
    for cand in range(start, 0, -32):
        if rows % cand == 0:
            return cand
    return rows


def maskflow_forward(x: jax.Array, *, force_kernel: bool = False) -> jax.Array:
    """Pallas equivalent of MaskFlow.forward: returns x unchanged.

    The module performs no computation, so by default this is a zero-cost
    pass-through for ALL input sizes.  Set force_kernel=True to route the data
    through a lane-dense identity copy kernel (used purely for pipeline
    exercising / testing).
    """
    if not force_kernel:
        # Unconditional fast path: the op is a no-op; moving data is pure waste.
        return x

    orig_shape = x.shape
    dtype = x.dtype
    itemsize = jnp.dtype(dtype).itemsize

    total = 1
    for d in orig_shape:
        total *= d
    if total == 0:
        return x

    tile_bytes = _tile_bytes_for_device()
    lane = _choose_lane(total)

    cost = pl.CostEstimate(
        flops=0,
        transcendentals=0,
        bytes_accessed=2 * total * itemsize,
    )

    if lane is None:
        # Element count has no 128-multiple factor: fall back to a single
        # whole-array 1-D block (block shape == full dim is always valid).
        flat = x.reshape(total)
        out_flat = pl.pallas_call(
            _identity_kernel,
            out_shape=jax.ShapeDtypeStruct((total,), dtype),
            grid_spec=pltpu.PrefetchScalarGridSpec(
                num_scalar_prefetch=0,
                grid=(1,),
                in_specs=[pl.BlockSpec((total,), lambda i: (0,))],
                out_specs=pl.BlockSpec((total,), lambda i: (0,)),
            ),
            compiler_params=pltpu.CompilerParams(
                dimension_semantics=("arbitrary",),
            ),
            cost_estimate=cost,
        )(flat)
        return out_flat.reshape(orig_shape)

    rows = total // lane
    # Budget in rows, rounded to a multiple of 32 (LCM of f32/bf16/int8
    # sublane packing) so packed dtypes never hit relayout / masked stores.
    budget_rows = max(32, (tile_bytes // (lane * itemsize)) // 32 * 32)
    tile_rows = _choose_tile_rows(rows, budget_rows)
    grid = (rows // tile_rows,)

    x2d = x.reshape(rows, lane)

    out2d = pl.pallas_call(
        _identity_kernel,
        out_shape=jax.ShapeDtypeStruct((rows, lane), dtype),
        grid_spec=pltpu.PrefetchScalarGridSpec(
            num_scalar_prefetch=0,
            grid=grid,
            in_specs=[pl.BlockSpec((tile_rows, lane), lambda i: (i, 0))],
            out_specs=pl.BlockSpec((tile_rows, lane), lambda i: (i, 0)),
        ),
        compiler_params=pltpu.CompilerParams(
            # Independent copy tiles -> megacore split on v7x when grid > 1.
            dimension_semantics=("parallel",),
        ),
        cost_estimate=cost,
        # NOTE: no input_output_aliases here — x2d is a reshape view of the
        # caller's array; aliasing would require an explicit donation contract.
    )(x2d)

    return out2d.reshape(orig_shape)


if __name__ == "__main__":
    key = jax.random.PRNGKey(0)
    # Small NCHW input consistent with a flow-net style module.
    x = jax.random.normal(key, (2, 4, 16, 16), dtype=jnp.float32)

    # Fast path (what production code should use: the module is a no-op).
    y_fast = jax.block_until_ready(maskflow_forward(x))
    assert y_fast.shape == x.shape and y_fast.dtype == x.dtype
    assert bool(jnp.all(y_fast == x))

    # Kernel path: exercise the pallas_call pipeline once (f32).
    y = jax.block_until_ready(maskflow_forward(x, force_kernel=True))
    assert y.shape == x.shape and y.dtype == x.dtype
    assert bool(jnp.all(y == x))

    # Also exercise a packed sub-32-bit dtype through the kernel path (bf16).
    xb = x.astype(jnp.bfloat16)
    yb = jax.block_until_ready(maskflow_forward(xb, force_kernel=True))
    assert yb.shape == xb.shape and yb.dtype == xb.dtype
    assert bool(jnp.all(yb == xb))

    print("KERNEL_OK")
</pallas_src>

<mosaic_0001>
module attributes {stable_mosaic.version = 11 : i64} {
  func.func @_identity_kernel(%arg0: i32, %arg1: memref<8x256xf32, #tpu.memory_space<vmem>>, %arg2: memref<8x256xf32, #tpu.memory_space<vmem>>) attributes {dimension_semantics = [#tpu.dimension_semantics<parallel>], iteration_bounds = array<i64: 1>, scalar_prefetch = 0 : i64, scratch_operands = 0 : i64, tpu.core_type = #tpu.core_type<tc>, window_params = [{transform_indices = @transform_0, window_bounds = array<i64: 8, 256>}, {transform_indices = @transform_1, window_bounds = array<i64: 8, 256>}]} {
    %c0 = arith.constant 0 : index
    %c0_0 = arith.constant 0 : index
    %0 = vector.load %arg1[%c0, %c0_0] : memref<8x256xf32, #tpu.memory_space<vmem>>, vector<8x256xf32>
    %c0_1 = arith.constant 0 : index
    %c0_2 = arith.constant 0 : index
    %1 = vector.load %arg2[%c0_1, %c0_2] : memref<8x256xf32, #tpu.memory_space<vmem>>, vector<8x256xf32>
    tpu.vector_store %arg2[%c0_1, %c0_2], %0 {strides = array<i32>} : memref<8x256xf32, #tpu.memory_space<vmem>>, vector<8x256xf32>,
    return
  }
  func.func @transform_0(%arg0: i32) -> (i32, i32) {
    %c0_i32 = arith.constant 0 : i32
    %c0_i32_0 = arith.constant 0 : i32
    return %arg0, %c0_i32 : i32, i32
  }
  func.func @transform_1(%arg0: i32) -> (i32, i32) {
    %c0_i32 = arith.constant 0 : i32
    %c0_i32_0 = arith.constant 0 : i32
    return %arg0, %c0_i32 : i32, i32
  }
}

</mosaic_0001>

<bundles_post_ra>
// kernel: tpu_custom_call.1
= control target key start
LH: loop header
LB: loop body
LE: loop exit
PB: predicated region body
PF: predicated region fallthrough
CT: control target
= control target key end

     0   :  { %6 = vsyncpa [#allocation3], 0  ;;  %s104_s0 = inlined_call_operand.hbm [shape: f32[8,256], index: 0, kind: input, shape index: {}]   ;;  %s105_s1 = inlined_call_operand.hbm [shape: f32[8,256], index: 1, kind: output, shape index: {}]  }
   0x1   :  { %7 = vsyncpa [#allocation4], 0  ;;  %s86_s6 = smov [#allocation2]  }
   0x2   :  { %s14_s7 = sshll.u32 %s86_s6, 4  ;;  %s15_s7 = int_to_ptr.vmem [resolvable:$true] %s14_s7 }
   0x3   :  { %s50_s8 = scalar_lea.vmem %s15_s7, 256  ;;  %p55_p1 = scmp.lt.s32.totalorder %s15_s7, %s15_s7 }
   0x4   :  { %p51_p0 = scmp.ne.s32.totalorder %s15_s7, %s50_s8  ;;  %p56_p2 = scmp.lt.s32.totalorder %s50_s8, %s50_s8 }
   0x6   :  { %p57_p3 = por %p56_p2, %p55_p1 }
   0x8   :  { %p58_p4 = pnand %p57_p3, %p51_p0 }
   0xa   :  { %61 = shalt.err (!%p58_p4)
}
   0xb   :  { %17 = dma.hbm_to_vmem [thread:$0]  %s104_s0, 256, %s15_s7, [#allocation3]  }
   0xc   :  { %82 = dma.done.wait [#allocation3], 256  }
   0xd   :  { %83 = vsyncadd [#allocation3], 4294967040  ;;  %s87_s11 = smov [#allocation5]   ;;  %v21_v0 = vld [vmem:[#allocation2] sm:$0xff]  ;;  %v22_v1 = vld [vmem:[#allocation2 + $0x8] sm:$0xff] }
   0xe   :  { %s31_s12 = sshll.u32 %s87_s11, 4  ;;  %23 = vst [vmem:[#allocation5] sm:$0xff] %v21_v0  ;;  %24 = vst [vmem:[#allocation5 + $0x8] sm:$0xff] %v22_v1  ;;  %s32_s12 = int_to_ptr.vmem [resolvable:$true] %s31_s12 }
   0xf   :  { %s62_s13 = scalar_lea.vmem %s32_s12, 256  ;;  %p67_p6 = scmp.lt.s32.totalorder %s32_s12, %s32_s12 }
  0x10   :  { %p63_p5 = scmp.ne.s32.totalorder %s32_s12, %s62_s13  ;;  %p68_p7 = scmp.lt.s32.totalorder %s62_s13, %s62_s13 }
  0x12   :  { %p69_p8 = por %p68_p7, %p67_p6 }
  0x14   :  { %p70_p9 = pnand %p69_p8, %p63_p5 }
  0x16   :  { %73 = shalt.err (!%p70_p9)
}
  0x17   :  { %34 = dma.vmem_to_hbm [thread:$0]  %s32_s12, 256, %s105_s1, [#allocation4]  }
  0x18   :  { %84 = dma.done.wait [#allocation4], 256  }
  0x19   :  { %85 = vsyncadd [#allocation4], 4294967040 }
  0x1a   :  { %38 = vsyncpa [#allocation3], 1 }
  0x1b   :  { %39 = vsyncpa [#allocation4], 1 }

</bundles_post_ra>
